<compile_context>
chip_gen: v5e
topology: v5e:2x2
jax: 0.10.0
libtpu: 0.0.40
codegen_flags: <defaults>
</compile_context>

<pallas_src>
import jax
import jax.numpy as jnp
from jax import lax
from jax.experimental import pallas as pl
from jax.experimental.pallas import tpu as pltpu


def _make_attention_kernel(has_mask):
    def kernel(*refs):
        if has_mask:
            (x_ref, mask_ref, wq_ref, bq_ref, wk_ref, bk_ref,
             wv_ref, bv_ref, wo_ref, bo_ref, out_ref, acc_ref) = refs
        else:
            (x_ref, wq_ref, bq_ref, wk_ref, bk_ref,
             wv_ref, bv_ref, wo_ref, bo_ref, out_ref, acc_ref) = refs
            mask_ref = None

        h = pl.program_id(1)
        num_heads = pl.num_programs(1)

        x = x_ref[0]                                    # (S, E) bf16

        # Per-head projections: K = E contraction on the MXU, f32 accumulation.
        # `scale` is pre-folded into wq / bq by the wrapper.
        q_h = jnp.dot(x, wq_ref[0], preferred_element_type=jnp.float32) + bq_ref[0]
        k_h = jnp.dot(x, wk_ref[0], preferred_element_type=jnp.float32) + bk_ref[0]
        v_h = jnp.dot(x, wv_ref[0], preferred_element_type=jnp.float32) + bv_ref[0]

        # scores = q_h @ k_h^T (contract head dim of both operands; no explicit
        # transpose materialized), bf16 operands -> f32 accumulation.
        scores = lax.dot_general(
            q_h.astype(jnp.bfloat16), k_h.astype(jnp.bfloat16),
            (((1,), (1,)), ((), ())),
            preferred_element_type=jnp.float32)         # (S, S) f32
        if has_mask:
            scores = scores + mask_ref[0]

        # Numerically stable f32 softmax; reciprocal goes to the EUP slot.
        m = jnp.max(scores, axis=-1, keepdims=True)
        e = jnp.exp(scores - m)
        denom = jnp.sum(e, axis=-1, keepdims=True)
        p = e * pl.reciprocal(denom, approx=True)       # (S, S) f32

        o_h = jnp.dot(p.astype(jnp.bfloat16), v_h.astype(jnp.bfloat16),
                      preferred_element_type=jnp.float32)            # (S, D)
        # out_proj fused as a sum over heads (no concat):
        #   concat_h(o_h) @ Wo == sum_h o_h @ Wo_h
        contrib = jnp.dot(o_h.astype(jnp.bfloat16), wo_ref[0],
                          preferred_element_type=jnp.float32)        # (S, E)

        @pl.when(h == 0)
        def _():
            acc_ref[...] = jnp.broadcast_to(
                bo_ref[...], acc_ref.shape).astype(jnp.float32)

        acc_ref[...] += contrib

        @pl.when(h == num_heads - 1)
        def _():
            out_ref[0] = acc_ref[...].astype(out_ref.dtype)

    return kernel


def clip_attention(hidden_states, q_w, q_b, k_w, k_b, v_w, v_b, o_w, o_b,
                   num_heads, attention_mask=None, causal_attention_mask=None,
                   compute_dtype=jnp.bfloat16):
    """
    hidden_states: (B, S, E)
    *_w:           (E, E) PyTorch nn.Linear weight layout (out, in)
    *_b:           (E,)   Linear bias
    attention_mask / causal_attention_mask: optional additive masks,
        broadcastable to (B, 1, S, S), like the PyTorch module.
    returns: (attn_output (B, S, E), None)   # attn_weights not returned
    """
    B, S, E = hidden_states.shape
    assert E % num_heads == 0
    D = E // num_heads
    scale = D ** -0.5
    out_dtype = hidden_states.dtype
    f32 = jnp.float32

    # Per-head weight slices: wq/wk/wv -> (H, E, D), wo -> (H, D, E).
    # Scale is folded into the q projection; weights shipped as bf16.
    wq3 = (q_w.astype(f32).reshape(num_heads, D, E).transpose(0, 2, 1)
           * scale).astype(compute_dtype)
    wk3 = k_w.astype(f32).reshape(num_heads, D, E).transpose(0, 2, 1).astype(compute_dtype)
    wv3 = v_w.astype(f32).reshape(num_heads, D, E).transpose(0, 2, 1).astype(compute_dtype)
    wo3 = o_w.astype(f32).T.reshape(num_heads, D, E).astype(compute_dtype)
    bq3 = (q_b.astype(f32) * scale).reshape(num_heads, 1, D)
    bk3 = k_b.astype(f32).reshape(num_heads, 1, D)
    bv3 = v_b.astype(f32).reshape(num_heads, 1, D)
    bo2 = o_b.astype(f32).reshape(1, E)

    x = hidden_states.astype(compute_dtype)             # bf16 activations

    # Combine additive masks; keep the original (broadcast) batch dim so a
    # batch-independent mask is DMA'd once and stays VMEM-resident.
    if attention_mask is not None and causal_attention_mask is not None:
        mask = attention_mask + causal_attention_mask
    elif attention_mask is not None:
        mask = attention_mask
    else:
        mask = causal_attention_mask
    has_mask = mask is not None
    if has_mask:
        mask = jnp.asarray(mask, dtype=jnp.float32)
        if mask.ndim == 2:
            mask = mask[None, None]
        elif mask.ndim == 3:
            mask = mask[:, None]
        Bm = mask.shape[0]
        mask = jnp.broadcast_to(mask, (Bm, 1, S, S)).reshape(Bm, S, S)
        if Bm == 1:
            mask_index = lambda b, h: (0, 0, 0)          # VMEM-resident once
        else:
            mask_index = lambda b, h: (b, 0, 0)

    head_slice = lambda b, h: (h, 0, 0)

    in_specs = [pl.BlockSpec((1, S, E), lambda b, h: (b, 0, 0))]
    inputs = [x]
    if has_mask:
        in_specs.append(pl.BlockSpec((1, S, S), mask_index))
        inputs.append(mask)
    for w, bias in ((wq3, bq3), (wk3, bk3), (wv3, bv3)):
        in_specs.append(pl.BlockSpec((1, E, D), head_slice))
        in_specs.append(pl.BlockSpec((1, 1, D), head_slice))
        inputs.extend([w, bias])
    in_specs.append(pl.BlockSpec((1, D, E), head_slice))
    in_specs.append(pl.BlockSpec((1, E), lambda b, h: (0, 0)))
    inputs.extend([wo3, bo2])

    grid_spec = pltpu.PrefetchScalarGridSpec(
        num_scalar_prefetch=0,
        grid=(B, num_heads),
        in_specs=in_specs,
        out_specs=pl.BlockSpec((1, S, E), lambda b, h: (b, 0, 0)),
        scratch_shapes=[pltpu.VMEM((S, E), jnp.float32)],
    )

    w_item = jnp.dtype(compute_dtype).itemsize
    flops = B * (2 * S * E * E * 4 + 4 * S * S * E)
    transcendentals = B * num_heads * S * S
    bytes_accessed = (B * S * E * w_item                       # activations in
                      + 4 * E * E * w_item + 4 * E * 4         # weights + biases
                      + (int(mask.size) * 4 if has_mask else 0)
                      + B * S * E * jnp.dtype(out_dtype).itemsize)  # output

    out = pl.pallas_call(
        _make_attention_kernel(has_mask),
        out_shape=jax.ShapeDtypeStruct((B, S, E), out_dtype),
        grid_spec=grid_spec,
        compiler_params=pltpu.CompilerParams(
            dimension_semantics=("parallel", "arbitrary"),
            vmem_limit_bytes=32 * 1024 * 1024),
        cost_estimate=pl.CostEstimate(
            flops=flops, transcendentals=transcendentals,
            bytes_accessed=bytes_accessed),
    )(*inputs)
    return out, None


def _reference(hidden_states, q_w, q_b, k_w, k_b, v_w, v_b, o_w, o_b,
               num_heads, mask=None):
    """Plain-JAX f32 reference mirroring the PyTorch eager forward."""
    B, S, E = hidden_states.shape
    D = E // num_heads
    scale = D ** -0.5
    q = hidden_states @ q_w.T + q_b
    k = hidden_states @ k_w.T + k_b
    v = hidden_states @ v_w.T + v_b
    q = q.reshape(B, S, num_heads, D).transpose(0, 2, 1, 3)
    k = k.reshape(B, S, num_heads, D).transpose(0, 2, 1, 3)
    v = v.reshape(B, S, num_heads, D).transpose(0, 2, 1, 3)
    scores = jnp.einsum("bhqd,bhkd->bhqk", q, k) * scale
    if mask is not None:
        scores = scores + mask
    p = jax.nn.softmax(scores.astype(jnp.float32), axis=-1)
    o = jnp.einsum("bhqk,bhkd->bhqd", p, v)
    o = o.transpose(0, 2, 1, 3).reshape(B, S, E)
    return o @ o_w.T + o_b


if __name__ == "__main__":
    batch_size, seq_len, hidden_size, num_heads = 2, 8, 32, 4

    key = jax.random.PRNGKey(0)
    ks = jax.random.split(key, 10)
    hidden_states = jax.random.normal(
        ks[0], (batch_size, seq_len, hidden_size), jnp.float32)
    q_w = jax.random.normal(ks[1], (hidden_size, hidden_size), jnp.float32) * 0.05
    k_w = jax.random.normal(ks[2], (hidden_size, hidden_size), jnp.float32) * 0.05
    v_w = jax.random.normal(ks[3], (hidden_size, hidden_size), jnp.float32) * 0.05
    o_w = jax.random.normal(ks[4], (hidden_size, hidden_size), jnp.float32) * 0.05
    q_b = jax.random.normal(ks[5], (hidden_size,), jnp.float32) * 0.05
    k_b = jax.random.normal(ks[6], (hidden_size,), jnp.float32) * 0.05
    v_b = jax.random.normal(ks[7], (hidden_size,), jnp.float32) * 0.05
    o_b = jax.random.normal(ks[8], (hidden_size,), jnp.float32) * 0.05

    # Additive causal mask like the CLIP text-model path.
    causal_mask = jnp.triu(
        jnp.full((seq_len, seq_len), -1e9, jnp.float32), k=1)[None, None]

    # bf16 MXU operands -> compare against the f32 reference with bf16-level
    # tolerances.
    TOL = dict(atol=2e-2, rtol=2e-2)

    # ---- with causal mask (text-encoder path) ----
    out_m, _ = clip_attention(hidden_states, q_w, q_b, k_w, k_b, v_w, v_b,
                              o_w, o_b, num_heads,
                              causal_attention_mask=causal_mask)
    out_m = jax.block_until_ready(out_m)
    ref_m = _reference(hidden_states, q_w, q_b, k_w, k_b, v_w, v_b, o_w, o_b,
                       num_heads, mask=causal_mask)
    assert out_m.shape == (batch_size, seq_len, hidden_size), out_m.shape
    assert jnp.allclose(out_m, ref_m, **TOL), \
        float(jnp.max(jnp.abs(out_m - ref_m)))

    # ---- no mask (vision-encoder path) ----
    out_p, _ = clip_attention(hidden_states, q_w, q_b, k_w, k_b, v_w, v_b,
                              o_w, o_b, num_heads)
    out_p = jax.block_until_ready(out_p)
    ref_p = _reference(hidden_states, q_w, q_b, k_w, k_b, v_w, v_b, o_w, o_b,
                       num_heads, mask=None)
    assert jnp.allclose(out_p, ref_p, **TOL), \
        float(jnp.max(jnp.abs(out_p - ref_p)))

    print("KERNEL_OK")
</pallas_src>

<mosaic_0001>
module attributes {stable_mosaic.version = 11 : i64} {
  func.func @kernel(%arg0: i32, %arg1: i32, %arg2: memref<1x8x32xbf16, #tpu.memory_space<vmem>>, %arg3: memref<1x8x8xf32, #tpu.memory_space<vmem>>, %arg4: memref<1x32x8xbf16, #tpu.memory_space<vmem>>, %arg5: memref<1x1x8xf32, #tpu.memory_space<vmem>>, %arg6: memref<1x32x8xbf16, #tpu.memory_space<vmem>>, %arg7: memref<1x1x8xf32, #tpu.memory_space<vmem>>, %arg8: memref<1x32x8xbf16, #tpu.memory_space<vmem>>, %arg9: memref<1x1x8xf32, #tpu.memory_space<vmem>>, %arg10: memref<1x8x32xbf16, #tpu.memory_space<vmem>>, %arg11: memref<1x32xf32, #tpu.memory_space<vmem>>, %arg12: memref<1x8x32xf32, #tpu.memory_space<vmem>>, %arg13: memref<8x32xf32, #tpu.memory_space<vmem>>) attributes {dimension_semantics = [#tpu.dimension_semantics<parallel>, #tpu.dimension_semantics<arbitrary>], iteration_bounds = array<i64: 2, 4>, scalar_prefetch = 0 : i64, scratch_operands = 1 : i64, tpu.core_type = #tpu.core_type<tc>, window_params = [{transform_indices = @transform_0, window_bounds = array<i64: 1, 8, 32>}, {pipeline_mode = #tpu.pipeline_mode<synchronous>, transform_indices = @transform_1, window_bounds = array<i64: 1, 8, 8>}, {transform_indices = @transform_2, window_bounds = array<i64: 1, 32, 8>}, {transform_indices = @transform_3, window_bounds = array<i64: 1, 1, 8>}, {transform_indices = @transform_4, window_bounds = array<i64: 1, 32, 8>}, {transform_indices = @transform_5, window_bounds = array<i64: 1, 1, 8>}, {transform_indices = @transform_6, window_bounds = array<i64: 1, 32, 8>}, {transform_indices = @transform_7, window_bounds = array<i64: 1, 1, 8>}, {transform_indices = @transform_8, window_bounds = array<i64: 1, 8, 32>}, {pipeline_mode = #tpu.pipeline_mode<synchronous>, transform_indices = @transform_9, window_bounds = array<i64: 1, 32>}, {transform_indices = @transform_10, window_bounds = array<i64: 1, 8, 32>}]} {
    %c0 = arith.constant 0 : index
    %c0_0 = arith.constant 0 : index
    %c0_1 = arith.constant 0 : index
    %0 = vector.load %arg2[%c0, %c0_0, %c0_1] : memref<1x8x32xbf16, #tpu.memory_space<vmem>>, vector<1x8x32xbf16>
    %1 = vector.shape_cast %0 : vector<1x8x32xbf16> to vector<8x32xbf16>
    %c0_2 = arith.constant 0 : index
    %c0_3 = arith.constant 0 : index
    %c0_4 = arith.constant 0 : index
    %2 = vector.load %arg4[%c0_2, %c0_3, %c0_4] : memref<1x32x8xbf16, #tpu.memory_space<vmem>>, vector<1x32x8xbf16>
    %3 = vector.shape_cast %2 : vector<1x32x8xbf16> to vector<32x8xbf16>
    %cst = arith.constant dense<0.000000e+00> : vector<8x8xf32>
    %4 = tpu.matmul %1, %3, %cst {dimension_numbers = #tpu.dot_dimension_numbers<[1], [0], [0], [1], [0, 0, 1, 1], [], []>} : vector<8x32xbf16>, vector<32x8xbf16>, vector<8x8xf32> -> vector<8x8xf32>
    %c0_5 = arith.constant 0 : index
    %c0_6 = arith.constant 0 : index
    %c0_7 = arith.constant 0 : index
    %5 = vector.load %arg5[%c0_5, %c0_6, %c0_7] : memref<1x1x8xf32, #tpu.memory_space<vmem>>, vector<1x1x8xf32>
    %6 = vector.shape_cast %5 : vector<1x1x8xf32> to vector<1x8xf32>
    %7 = vector.broadcast %6 : vector<1x8xf32> to vector<8x8xf32>
    %8 = arith.addf %4, %7 : vector<8x8xf32>
    %c0_8 = arith.constant 0 : index
    %c0_9 = arith.constant 0 : index
    %c0_10 = arith.constant 0 : index
    %9 = vector.load %arg6[%c0_8, %c0_9, %c0_10] : memref<1x32x8xbf16, #tpu.memory_space<vmem>>, vector<1x32x8xbf16>
    %10 = vector.shape_cast %9 : vector<1x32x8xbf16> to vector<32x8xbf16>
    %cst_11 = arith.constant dense<0.000000e+00> : vector<8x8xf32>
    %11 = tpu.matmul %1, %10, %cst_11 {dimension_numbers = #tpu.dot_dimension_numbers<[1], [0], [0], [1], [0, 0, 1, 1], [], []>} : vector<8x32xbf16>, vector<32x8xbf16>, vector<8x8xf32> -> vector<8x8xf32>
    %c0_12 = arith.constant 0 : index
    %c0_13 = arith.constant 0 : index
    %c0_14 = arith.constant 0 : index
    %12 = vector.load %arg7[%c0_12, %c0_13, %c0_14] : memref<1x1x8xf32, #tpu.memory_space<vmem>>, vector<1x1x8xf32>
    %13 = vector.shape_cast %12 : vector<1x1x8xf32> to vector<1x8xf32>
    %14 = vector.broadcast %13 : vector<1x8xf32> to vector<8x8xf32>
    %15 = arith.addf %11, %14 : vector<8x8xf32>
    %c0_15 = arith.constant 0 : index
    %c0_16 = arith.constant 0 : index
    %c0_17 = arith.constant 0 : index
    %16 = vector.load %arg8[%c0_15, %c0_16, %c0_17] : memref<1x32x8xbf16, #tpu.memory_space<vmem>>, vector<1x32x8xbf16>
    %17 = vector.shape_cast %16 : vector<1x32x8xbf16> to vector<32x8xbf16>
    %cst_18 = arith.constant dense<0.000000e+00> : vector<8x8xf32>
    %18 = tpu.matmul %1, %17, %cst_18 {dimension_numbers = #tpu.dot_dimension_numbers<[1], [0], [0], [1], [0, 0, 1, 1], [], []>} : vector<8x32xbf16>, vector<32x8xbf16>, vector<8x8xf32> -> vector<8x8xf32>
    %c0_19 = arith.constant 0 : index
    %c0_20 = arith.constant 0 : index
    %c0_21 = arith.constant 0 : index
    %19 = vector.load %arg9[%c0_19, %c0_20, %c0_21] : memref<1x1x8xf32, #tpu.memory_space<vmem>>, vector<1x1x8xf32>
    %20 = vector.shape_cast %19 : vector<1x1x8xf32> to vector<1x8xf32>
    %21 = vector.broadcast %20 : vector<1x8xf32> to vector<8x8xf32>
    %22 = arith.addf %18, %21 : vector<8x8xf32>
    %23 = arith.truncf %8 : vector<8x8xf32> to vector<8x8xbf16>
    %24 = arith.truncf %15 : vector<8x8xf32> to vector<8x8xbf16>
    %cst_22 = arith.constant dense<0.000000e+00> : vector<8x8xf32>
    %25 = tpu.matmul %23, %24, %cst_22 {dimension_numbers = #tpu.dot_dimension_numbers<[1], [1], [0], [0], [0, 0, 1, 0], [], []>} : vector<8x8xbf16>, vector<8x8xbf16>, vector<8x8xf32> -> vector<8x8xf32>
    %c0_23 = arith.constant 0 : index
    %c0_24 = arith.constant 0 : index
    %c0_25 = arith.constant 0 : index
    %26 = vector.load %arg3[%c0_23, %c0_24, %c0_25] : memref<1x8x8xf32, #tpu.memory_space<vmem>>, vector<1x8x8xf32>
    %27 = vector.shape_cast %26 : vector<1x8x8xf32> to vector<8x8xf32>
    %28 = arith.addf %25, %27 : vector<8x8xf32>
    %cst_26 = arith.constant dense<0xFF800000> : vector<8xf32>
    %29 = vector.multi_reduction <maximumf>, %28, %cst_26 [1] : vector<8x8xf32> to vector<8xf32>
    %30 = vector.shape_cast %29 : vector<8xf32> to vector<8x1xf32>
    %31 = vector.broadcast %30 : vector<8x1xf32> to vector<8x8xf32>
    %32 = arith.subf %28, %31 : vector<8x8xf32>
    %33 = math.exp %32 : vector<8x8xf32>
    %cst_27 = arith.constant dense<0.000000e+00> : vector<8xf32>
    %34 = vector.multi_reduction <add>, %33, %cst_27 [1] : vector<8x8xf32> to vector<8xf32>
    %35 = vector.shape_cast %34 : vector<8xf32> to vector<8x1xf32>
    %36 = tpu.reciprocal %35 {approx = true} : vector<8x1xf32> -> vector<8x1xf32>
    %37 = vector.broadcast %36 : vector<8x1xf32> to vector<8x8xf32>
    %38 = arith.mulf %33, %37 : vector<8x8xf32>
    %39 = arith.truncf %38 : vector<8x8xf32> to vector<8x8xbf16>
    %40 = arith.truncf %22 : vector<8x8xf32> to vector<8x8xbf16>
    %cst_28 = arith.constant dense<0.000000e+00> : vector<8x8xf32>
    %41 = tpu.matmul %39, %40, %cst_28 {dimension_numbers = #tpu.dot_dimension_numbers<[1], [0], [0], [1], [0, 0, 1, 1], [], []>} : vector<8x8xbf16>, vector<8x8xbf16>, vector<8x8xf32> -> vector<8x8xf32>
    %42 = arith.truncf %41 : vector<8x8xf32> to vector<8x8xbf16>
    %c0_29 = arith.constant 0 : index
    %c0_30 = arith.constant 0 : index
    %c0_31 = arith.constant 0 : index
    %43 = vector.load %arg10[%c0_29, %c0_30, %c0_31] : memref<1x8x32xbf16, #tpu.memory_space<vmem>>, vector<1x8x32xbf16>
    %44 = vector.shape_cast %43 : vector<1x8x32xbf16> to vector<8x32xbf16>
    %cst_32 = arith.constant dense<0.000000e+00> : vector<8x32xf32>
    %45 = tpu.matmul %42, %44, %cst_32 {dimension_numbers = #tpu.dot_dimension_numbers<[1], [0], [0], [1], [0, 0, 1, 1], [], []>} : vector<8x8xbf16>, vector<8x32xbf16>, vector<8x32xf32> -> vector<8x32xf32>
    %c0_i32 = arith.constant 0 : i32
    %46 = arith.cmpi eq, %arg1, %c0_i32 : i32
    %47 = arith.extui %46 : i1 to i32
    %c0_i32_33 = arith.constant 0 : i32
    %48 = arith.cmpi ne, %47, %c0_i32_33 : i32
    scf.if %48 {
      %c0_39 = arith.constant 0 : index
      %c0_40 = arith.constant 0 : index
      %55 = vector.load %arg11[%c0_39, %c0_40] : memref<1x32xf32, #tpu.memory_space<vmem>>, vector<1x32xf32>
      %56 = vector.shape_cast %55 : vector<1x32xf32> to vector<1x32xf32>
      %57 = vector.broadcast %56 : vector<1x32xf32> to vector<8x32xf32>
      %c0_41 = arith.constant 0 : index
      %c0_42 = arith.constant 0 : index
      %58 = vector.load %arg13[%c0_41, %c0_42] : memref<8x32xf32, #tpu.memory_space<vmem>>, vector<8x32xf32>
      tpu.vector_store %arg13[%c0_41, %c0_42], %57 {strides = array<i32>} : memref<8x32xf32, #tpu.memory_space<vmem>>, vector<8x32xf32>,
    } else {
    }
    %c0_34 = arith.constant 0 : index
    %c0_35 = arith.constant 0 : index
    %49 = vector.load %arg13[%c0_34, %c0_35] : memref<8x32xf32, #tpu.memory_space<vmem>>, vector<8x32xf32>
    %50 = arith.addf %49, %45 : vector<8x32xf32>
    %c0_36 = arith.constant 0 : index
    %c0_37 = arith.constant 0 : index
    %51 = vector.load %arg13[%c0_36, %c0_37] : memref<8x32xf32, #tpu.memory_space<vmem>>, vector<8x32xf32>
    tpu.vector_store %arg13[%c0_36, %c0_37], %50 {strides = array<i32>} : memref<8x32xf32, #tpu.memory_space<vmem>>, vector<8x32xf32>,
    %c3_i32 = arith.constant 3 : i32
    %52 = arith.cmpi eq, %arg1, %c3_i32 : i32
    %53 = arith.extui %52 : i1 to i32
    %c0_i32_38 = arith.constant 0 : i32
    %54 = arith.cmpi ne, %53, %c0_i32_38 : i32
    scf.if %54 {
      %c0_39 = arith.constant 0 : index
      %c0_40 = arith.constant 0 : index
      %55 = vector.load %arg13[%c0_39, %c0_40] : memref<8x32xf32, #tpu.memory_space<vmem>>, vector<8x32xf32>
      %c0_41 = arith.constant 0 : index
      %c0_42 = arith.constant 0 : index
      %c0_43 = arith.constant 0 : index
      %56 = vector.load %arg12[%c0_41, %c0_42, %c0_43] : memref<1x8x32xf32, #tpu.memory_space<vmem>>, vector<1x8x32xf32>
      %57 = vector.shape_cast %56 : vector<1x8x32xf32> to vector<8x32xf32>
      %58 = vector.shape_cast %55 : vector<8x32xf32> to vector<1x8x32xf32>
      tpu.vector_store %arg12[%c0_41, %c0_42, %c0_43], %58 {strides = array<i32>} : memref<1x8x32xf32, #tpu.memory_space<vmem>>, vector<1x8x32xf32>,
    } else {
    }
    return
  }
  func.func @transform_0(%arg0: i32, %arg1: i32) -> (i32, i32, i32) {
    %c0_i32 = arith.constant 0 : i32
    %c0_i32_0 = arith.constant 0 : i32
    %c0_i32_1 = arith.constant 0 : i32
    return %arg0, %c0_i32, %c0_i32_0 : i32, i32, i32
  }
  func.func @transform_1(%arg0: i32, %arg1: i32) -> (i32, i32, i32) {
    %c0_i32 = arith.constant 0 : i32
    %c0_i32_0 = arith.constant 0 : i32
    %c0_i32_1 = arith.constant 0 : i32
    %c0_i32_2 = arith.constant 0 : i32
    return %c0_i32, %c0_i32_0, %c0_i32_1 : i32, i32, i32
  }
  func.func @transform_2(%arg0: i32, %arg1: i32) -> (i32, i32, i32) {
    %c0_i32 = arith.constant 0 : i32
    %c0_i32_0 = arith.constant 0 : i32
    %c0_i32_1 = arith.constant 0 : i32
    return %arg1, %c0_i32, %c0_i32_0 : i32, i32, i32
  }
  func.func @transform_3(%arg0: i32, %arg1: i32) -> (i32, i32, i32) {
    %c0_i32 = arith.constant 0 : i32
    %c0_i32_0 = arith.constant 0 : i32
    %c0_i32_1 = arith.constant 0 : i32
    return %arg1, %c0_i32, %c0_i32_0 : i32, i32, i32
  }
  func.func @transform_4(%arg0: i32, %arg1: i32) -> (i32, i32, i32) {
    %c0_i32 = arith.constant 0 : i32
    %c0_i32_0 = arith.constant 0 : i32
    %c0_i32_1 = arith.constant 0 : i32
    return %arg1, %c0_i32, %c0_i32_0 : i32, i32, i32
  }
  func.func @transform_5(%arg0: i32, %arg1: i32) -> (i32, i32, i32) {
    %c0_i32 = arith.constant 0 : i32
    %c0_i32_0 = arith.constant 0 : i32
    %c0_i32_1 = arith.constant 0 : i32
    return %arg1, %c0_i32, %c0_i32_0 : i32, i32, i32
  }
  func.func @transform_6(%arg0: i32, %arg1: i32) -> (i32, i32, i32) {
    %c0_i32 = arith.constant 0 : i32
    %c0_i32_0 = arith.constant 0 : i32
    %c0_i32_1 = arith.constant 0 : i32
    return %arg1, %c0_i32, %c0_i32_0 : i32, i32, i32
  }
  func.func @transform_7(%arg0: i32, %arg1: i32) -> (i32, i32, i32) {
    %c0_i32 = arith.constant 0 : i32
    %c0_i32_0 = arith.constant 0 : i32
    %c0_i32_1 = arith.constant 0 : i32
    return %arg1, %c0_i32, %c0_i32_0 : i32, i32, i32
  }
  func.func @transform_8(%arg0: i32, %arg1: i32) -> (i32, i32, i32) {
    %c0_i32 = arith.constant 0 : i32
    %c0_i32_0 = arith.constant 0 : i32
    %c0_i32_1 = arith.constant 0 : i32
    return %arg1, %c0_i32, %c0_i32_0 : i32, i32, i32
  }
  func.func @transform_9(%arg0: i32, %arg1: i32) -> (i32, i32) {
    %c0_i32 = arith.constant 0 : i32
    %c0_i32_0 = arith.constant 0 : i32
    %c0_i32_1 = arith.constant 0 : i32
    return %c0_i32, %c0_i32_0 : i32, i32
  }
  func.func @transform_10(%arg0: i32, %arg1: i32) -> (i32, i32, i32) {
    %c0_i32 = arith.constant 0 : i32
    %c0_i32_0 = arith.constant 0 : i32
    %c0_i32_1 = arith.constant 0 : i32
    return %arg0, %c0_i32, %c0_i32_0 : i32, i32, i32
  }
}

</mosaic_0001>

<bundles_post_ra>
// kernel: tpu_custom_call.1
= control target key start
LH: loop header
LB: loop body
LE: loop exit
PB: predicated region body
PF: predicated region fallthrough
CT: control target
= control target key end

     0   :  { %s1315_s0 = inlined_call_operand.vmem [shape: bf16[2,8,32], index: 0, kind: input, shape index: {}]   ;;  %s1316_s1 = inlined_call_operand.vmem [shape: f32[1,8,8], index: 1, kind: input, shape index: {}]   ;;  %s1317_s2 = inlined_call_operand.vmem [shape: bf16[4,32,8], index: 2, kind: input, shape index: {}]   ;;  %s1318_s3 = inlined_call_operand.vmem [shape: f32[4,1,8], index: 3, kind: input, shape index: {}]   ;;  %s1319_s4 = inlined_call_operand.vmem [shape: bf16[4,32,8], index: 4, kind: input, shape index: {}]   ;;  %s1320_s5 = inlined_call_operand.vmem [shape: f32[4,1,8], index: 5, kind: input, shape index: {}]   ;;  %s1321_s6 = inlined_call_operand.vmem [shape: bf16[4,32,8], index: 6, kind: input, shape index: {}]   ;;  %s1322_s7 = inlined_call_operand.vmem [shape: f32[4,1,8], index: 7, kind: input, shape index: {}]   ;;  %s1323_s8 = inlined_call_operand.vmem [shape: bf16[4,8,32], index: 8, kind: input, shape index: {}]   ;;  %s1324_s9 = inlined_call_operand.vmem [shape: f32[1,32], index: 9, kind: input, shape index: {}]   ;;  %s1325_s10 = inlined_call_operand.hbm [shape: f32[2,8,32], index: 10, kind: output, shape index: {}]  }
   0x1   :  { %1335 = sst [smem:[#allocation15_spill]] %s1318_s3 }
   0x2   :  { %15 = vsyncpa [#allocation4], 0 }
   0x3   :  { %17 = vsyncpa [#allocation4 + $0x1], 0  ;;  %s1136_s13 = smov 0   ;;  %s1138_s14 = smov 0  }
   0x4   :  { %s1140_s15 = smov 0   ;;  %s1142_s16 = smov 0  }
   0x5   :  { %s1144_s17 = smov 0   ;;  %s1146_s18 = smov 0  }
   0x6   :  { %s1148_s19 = smov 0   ;;  %s1150_s20 = smov 0  }
   0x7 LB: > { %1336 = sst [smem:[#allocation6_spill]] %s1051_s13  ;;  %s847_s21 = sadd.s32 4294967295, %s1079_s20   ;;  %s1079_s20 = sphi %s1150_s20, %s23_s20   ;;  %s1075_s19 = sphi %s1148_s19, %s1360_s19   ;;  %s1071_s18 = sphi %s1146_s18, %s1356_s18   ;;  %s1067_s17 = sphi %s1144_s17, %s1355_s17   ;;  %s1063_s16 = sphi %s1142_s16, %s1354_s16   ;;  %s1059_s15 = sphi %s1140_s15, %s1353_s15   ;;  %s1055_s14 = sphi %s1138_s14, %s1359_s14   ;;  %s1051_s13 = sphi %s1136_s13, %s1358_s13  }
   0x8   : > { %1337 = sst [smem:[#allocation7_spill]] %s1059_s15  ;;  %s848_s22 = sadd.s32 4294967294, %s1079_s20  }
   0x9   : > { %1338 = sst [smem:[#allocation8_spill]] %s1071_s18  ;;  %s32_s23 = sadd.s32 1, %s1071_s18 }
   0xa   : > { %1339 = sst [smem:[#allocation9_spill]] %s1075_s19  ;;  %p33_p0 = scmp.ge.s32.totalorder %s32_s23, 4 }
   0xb   : > { %1340 = sst [smem:[#allocation10_spill]] %s1079_s20  ;;  %s35_s24 = sadd.s32 1, %s1075_s19 }
   0xc   : > { %p302_p1 = scmp.ne.s32.totalorder %s1059_s15, %s1055_s14  ;;  %p303_p2 = scmp.eq.s32.totalorder %s847_s21, 7 }
   0xd   : > { %s1362_s23 = smov (%p33_p0, %s32_s23), 0  ;;  %s1364_s24 = smov (!%p33_p0, %s35_s24), %s1075_s19 }
   0xe   : > { %1341 = sst [smem:[#allocation11_spill]] %s1362_s23  ;;  %p1185_p3 = por %p303_p2, %p302_p1 }
   0xf   : > { %p308_p4 = scmp.ne.s32.totalorder %s1055_s14, %s1051_s13  ;;  %p37_p5 = scmp.ge.s32.totalorder %s1364_s24, 2 }
  0x10   : > { %p309_p6 = scmp.eq.s32.totalorder %s848_s22, 7  ;;  %p851_p7 = scmp.ge.s32.totalorder %s1079_s20, 1 }
  0x11   : > { %p389_p8 = scmp.lt.s32.totalorder %s1079_s20, 9  ;;  %s1366_s24 = smov (%p37_p5, %s1364_s24), 0 }
  0x12   : > { %1343 = sst [smem:[#allocation12_spill]] %s1366_s24  ;;  %p1195_p9 = por %p309_p6, %p308_p4 }
  0x13   : > { %p390_p10 = pnand %p851_p7, %p389_p8  ;;  %s289_s27 = ssub.s32 %s1075_s19, %s1366_s24 }
  0x14   : > { %s1344_s26 = scalar_select %p1195_p9, 1, 0 }
  0x15   : > { %s292_s28 = sadd.s32 1, %s1059_s15  ;;  %p290_p11 = scmp.eq.s32.totalorder %s289_s27, 0 }
  0x16   : > { %1345 = sst [smem:[#allocation13_spill]] %s1344_s26  ;;  %393 = sbr.rel (%p390_p10) target bundleno = 865 (0x361), region = 60 }
  0x17   : > { %s1203_s29 = scalar_select %p290_p11, %s1059_s15, %s292_s28  }
  0x18   : > { %s1328_s30 = sand.u32 (!%p390_p10), 1, %s1055_s14   ;;  %p458_p12 = scmp.lt.s32.totalorder (!%p390_p10), %s1063_s16, 3 }
  0x19   : > { %1346 = sst [smem:[#allocation14_spill]] %s1203_s29  ;;  %s1209_s11 = sshll.u32 (!%p390_p10), %s1328_s30, 3 }
  0x1a   : > { %p454_p13 = scmp.lt.s32.totalorder (!%p390_p10), %s1067_s17, 1  ;;  %s1347_s3 = sld [smem:[#allocation15_spill]] (!%p390_p10) }
  0x1b   : > { %s1213_s12 = scalar_select %p458_p12, %s1063_s16, 3  ;;  %vm508_vm0 = vcmask 261120   ;;  %vm594_vm1 = vcmask 64512   ;;  %v593_v18 = vld [vmem:[%s1316_s1] sm:$0xff]  ;;  %vm630_vm2 = vcmask 1043456  }
  0x1c   : > { %s455_s21 = scalar_select %p454_p13, %s1067_s17, 1 }
  0x1d   : > { %s1217_s22 = sshll.u32 %s1213_s12, 4  ;;  %s473_s19 = scalar_lea.vmem %s1320_s5, %s1213_s12 }
  0x1e   : > { %s462_s30 = scalar_lea.vmem %s1317_s2, %s1217_s22  ;;  %s470_s15 = scalar_lea.vmem %s1319_s4, %s1217_s22  ;;  %v978_v5 = vld [vmem:[%s473_s19] ss:$0 sm:$0xff] }
  0x1f   : > { %v901_v0 = vld [vmem:[%s462_s30 + $0x8] sm:$0xff]  ;;  %s853_s26 = sshll.u32 %s455_s21, 2  ;;  %v900_v2 = vld [vmem:[%s462_s30] sm:$0xff]  ;;  %s860_s29 = sshll.u32 %s1213_s12, 2 }
  0x20   : > { %s465_s24 = scalar_lea.vmem %s1347_s3, %s1213_s12  ;;  %v903_v1 = vld [vmem:[%s470_s15 + $0x8] sm:$0xff]  ;;  %518 = vmatpush.bf16.msra.mxu0 %v901_v0  ;;  %v902_v3 = vld [vmem:[%s470_s15] sm:$0xff]  ;;  %s457_s28 = scalar_lea.vmem %s1315_s0, %s853_s26 }
  0x21   : > { %551 = vmatpush.bf16.msra.mxu1 %v903_v1  ;;  %v487_v4 = vld [vmem:[%s457_s28] sm:$0xf]  ;;  %s478_s15 = scalar_lea.vmem %s1321_s6, %s1217_s22  ;;  %s481_s26 = scalar_lea.vmem %s1322_s7, %s1213_s12 }
  0x22   : > { %v977_v8 = vld [vmem:[%s465_s24] ss:$0 sm:$0xff]  ;;  %v905_v16 = vld [vmem:[%s478_s15 + $0x8] sm:$0xff]  ;;  %s485_s22 = scalar_lea.vmem %s1323_s8, %s860_s29  ;;  %s453_s12 = scalar_lea.vmem [#allocation3], %s1209_s11 }
  0x23   : > { %584 = vmatpush.bf16.msra.mxu2 %v905_v16  ;;  %v904_v17 = vld [vmem:[%s478_s15] sm:$0xff]  ;;  %p891_p0 = scmp.ne.s32.totalorder %s1063_s16, 0 }
  0x24   : > { %519 = vmatpush.bf16.msra.mxu0 %v900_v2  ;;  %v979_v23 = vld [vmem:[%s481_s26] ss:$0 sm:$0xff] }
  0x25   : > { %552 = vmatpush.bf16.msra.mxu1 %v902_v3  ;;  %v648_v34 = vld [vmem:[%s485_s22] sm:$0xf] }
  0x26   : > { %v653_v35 = vsel %vm630_vm2, %v648_v34, 0 }
  0x27   : > { %869 = vmatmul.msk.bf16.vlgmr.msra.gmra.mxu0 %vm508_vm0, %v487_v4  ;;  %585 = vmatpush.bf16.msra.mxu2 %v904_v17 }
  0x28   : > { %878 = vmatmul.msk.bf16.vlgmr.msra.gmra.mxu1 %vm508_vm0, %v487_v4 }
  0x29   : > { %662 = vmatpush.bf16.msrb.mxu1 %v653_v35 }
  0x2a   : > { %887 = vmatmul.msk.bf16.vlgmr.msra.gmra.mxu2 %vm508_vm0, %v487_v4 }
  0xa4   : > { %v521_v6 = vpop.f32.mrf.mxu0 }
  0xa5   : > { %v554_v7 = vpop.f32.mrf.mxu1  ;;  %v522_v11 = vadd.f32 %v977_v8, %v521_v6 }
  0xa6   : > { %v555_v9 = vadd.f32 %v978_v5, %v554_v7 }
  0xa7   : > { %v591_v15 = vpack.c.bf16 %v522_v11, %v522_v11 }
  0xa8   : > { %v592_v10 = vpack.c.bf16 %v555_v9, %v555_v9 }
  0xaa   : > { %v599_v12 = vsel %vm594_vm1, %v592_v10, 0 }
  0xab   : > { %608 = vmatpush.bf16.xpose.msra.mxu3 %v599_v12 }
  0xac   : > { %v523_v13 = vpop.f32.mrf.mxu0 }
  0xad   : > { %v556_v14 = vpop.f32.mrf.mxu1  ;;  %v587_v24 = vpop.f32.mrf.mxu2 }
  0xae   : > { %v588_v25 = vadd.f32 %v979_v23, %v587_v24 }
  0xb0   : > { %v626_v27 = vpack.c.bf16 %v588_v25, %v588_v25 }
  0xb2   : > { %888 = vmatmul.msk.bf16.vlgmr.msra.gmra.mxu3 %vm594_vm1, %v591_v15  ;;  %v632_v29 = vsel %vm630_vm2, %v626_v27, 0 }
  0xb3   : > { %641 = vmatpush.bf16.msrb.mxu0 %v632_v29 }
  0xb5   : > { %v589_v31 = vpop.f32.mrf.mxu2 }
 0x135   : > { %v610_v19 = vpop.f32.mrf.mxu3 }
 0x136   : > { %v611_v20 = vadd.f32 %v610_v19, %v593_v18 }
 0x138   : > { %v614_v21 = vsel %vm594_vm1, %v611_v20, -inf }
 0x139   : > { %615 = vmax.xlane.f32.xlu0 %v614_v21 }
 0x13d   : > { %v612_v22 = vpop.f32.mrf.mxu3 }
 0x1ac   : > { %v616_v26 = vpop.xlane.xlu0 %615 }
 0x1ad   : > { %v617_v28 = vsub.f32 %v611_v20, %v616_v26 }
 0x1af   : > { %v618_v30 = vmul.f32 1.442695, %v617_v28 }
 0x1b1   : > { %980 = vpow2.f32 %v618_v30 }
 0x1b7   : > { %v981_v32 = vpop.eup %980 }
 0x1b8   : > { %v620_v33 = vsel %vm594_vm1, %v981_v32, 0.0 }
 0x1b9   : > { %621 = vadd.xlane.f32.xlu0 %v620_v33 }
 0x22c   : > { %v622_v36 = vpop.xlane.xlu0 %621 }
 0x22d   : > { %982 = vrcp.f32 %v622_v36 }
 0x233   : > { %v983_v37 = vpop.eup %982 }
 0x234   : > { %v624_v38 = vmul.f32 %v983_v37, %v981_v32 }
 0x236   : > { %v625_v39 = vpack.c.bf16 %v624_v38, %v624_v38 }
 0x238   : > { %889 = vmatmul.msk.bf16.vlgmr.msrb.gmra.mxu0 %vm594_vm1, %v625_v39 }
 0x2b5   : > { %v643_v40 = vpop.f32.mrf.mxu0 }
 0x2b6   : > { %v647_v41 = vpack.c.bf16 %v643_v40, %v643_v40 }
 0x2b8   : > { %890 = vmatmul.msk.bf16.vlgmr.msrb.gmra.mxu1 %vm594_vm1, %v647_v41 }
 0x2bd   : > { %v645_v42 = vpop.f32.mrf.mxu0 }
 0x335   : > { %v664_v43 = vpop.f32.mrf.mxu1 }
 0x339   : > { %671 = sbr.rel (%p891_p0) target bundleno = 832 (0x340), region = 64 }
 0x33d   : > { %v666_v44 = vpop.f32.mrf.mxu1 }
 0x33e   : > { %v984_v45 = vld [vmem:[%s1324_s9] ss:$0 sm:$0xff] }
 0x33f   : > { %676 = vst.msk [vmem:[#allocation2] sm:$0xff] %vm508_vm0, %v984_v45 }
 0x340 PF: > { %p892_p1 = scmp.ne.s32.totalorder %s1063_s16, 3 }
 0x345   : > { %683 = sbr.rel (%p892_p1) target bundleno = 850 (0x352), region = 68 }
 0x346   : > { %v677_v46 = vld [vmem:[#allocation2] sm:$0xff] }
 0x347   : > { %v678_v47 = vadd.f32 %v677_v46, %v664_v43 }
 0x349   : > { %679 = vst.msk [vmem:[#allocation2] sm:$0xff] %vm508_vm0, %v678_v47 }
 0x350   : > { %v684_v48 = vld [vmem:[#allocation2] sm:$0xff] }
 0x351   : > { %685 = vst.msk [vmem:[%s453_s12] sm:$0xff] %vm508_vm0, %v684_v48 }
 0x352 PF: > { %s894_s11 = sshll.u32 %s1067_s17, 3  ;;  %s699_s15 = sshll.u32 %s453_s12, 4  ;;  %s700_s15 = int_to_ptr.vmem [resolvable:$true] %s699_s15 }
 0x353   : > { %s697_s13 = scalar_lea.hbm %s1325_s10, %s894_s11  ;;  %s1348_s20 = sand.u32 1, %s1055_s14  }
 0x354   : > { %s701_s18 = sshll.u32 %s697_s13, 4  ;;  %s687_s23 = scalar_lea.sflag [#allocation4], %s1348_s20  ;;  %s702_s18 = int_to_ptr.hbm [resolvable:$true] %s701_s18 }
 0x355   : > { %s999_s16 = sshra.s32 %s702_s18, 4  ;;  %s1005_s17 = scalar_lea.hbm %s1325_s10, 16  ;;  %s1000_s16 = int_to_ptr.hbm [resolvable:$true] %s999_s16 }
 0x356   : > { %s1001_s24 = scalar_lea.hbm %s1000_s16, 8  ;;  %p1006_p6 = scmp.lt.s32.totalorder %s1000_s16, %s1325_s10 }
 0x357   : > { %p1002_p2 = scmp.ne.s32.totalorder %s1000_s16, %s1001_s24  ;;  %p1007_p7 = scmp.lt.s32.totalorder %s1005_s17, %s1001_s24 }
 0x359   : > { %p1003_p4 = pnand %p1002_p2, %p1185_p3  ;;  %p1008_p8 = por %p1007_p7, %p1006_p6 }
 0x35b   : > { %p1004_p5 = pneg %p1003_p4 }
 0x35d   : > { %p1009_p10 = pnand %p1008_p8, %p1004_p5 }
 0x35f   : > { %1012 = shalt.err (!%p1009_p10)
}
 0x360   : > { %906 = dma.vmem_to_hbm [thread:$0]  (%p1185_p3), %s700_s15, 128, %s702_s18, %s687_s23  }
 0x361 PF: > { %s1349_s22 = sld [smem:[#allocation10_spill]] }
 0x362   : > { %s1350_s12 = sld [smem:[#allocation6_spill]] }
 0x367   : > { %p912_p11 = scmp.ge.s32.totalorder %s1349_s22, 2 }
 0x368   : > { %s713_s28 = sand.u32 1, %s1350_s12  }
 0x369   : > { %p909_p12 = pnand %p912_p11, %p1195_p9  ;;  %s714_s11 = scalar_lea.sflag [#allocation4], %s713_s28 }
 0x36b   : > { %p910_p13 = pneg %p909_p12 }
 0x36d   : > { %1046 = dma.done.wait (%p910_p13), %s714_s11, 128  }
 0x36e   : > { %1048 = vsyncadd (%p910_p13), %s714_s11, 4294967168  ;;  %s23_s20 = sadd.s32 1, %s1349_s22   ;;  %s1352_s19 = sld [smem:[#allocation7_spill]] }
 0x36f   : > { %p20_p0 = scmp.ge.s32.totalorder %s23_s20, 10   ;;  %s1353_s15 = sld [smem:[#allocation14_spill]] }
 0x370   : > { %s1354_s16 = sld [smem:[#allocation8_spill]]  ;;  %s1358_s13 = smov %s1055_s14 }
 0x371   : > { %s1355_s17 = sld [smem:[#allocation9_spill]] }
 0x372   : > { %s1356_s18 = sld [smem:[#allocation11_spill]] }
 0x373   : > { %s1357_s25 = sld [smem:[#allocation12_spill]] }
 0x374   : > { %s1359_s14 = smov %s1352_s19 }
 0x375   :  { %22 = sbr.rel (!%p20_p0) target bundleno = 7 (0x7), region = 124 }
 0x379   : > { %s1360_s19 = smov %s1357_s25 }
 0x37a   :  { %720 = vsyncpa [#allocation4], 1 }
 0x37b   :  { %722 = vsyncpa [#allocation4 + $0x1], 1 }

</bundles_post_ra>
